<compile_context>
chip_gen: v5e
topology: v5e:2x2
jax: 0.10.0
libtpu: 0.0.40
codegen_flags: <defaults>
</compile_context>

<pallas_src>
import functools

import jax
import jax.numpy as jnp
from jax.experimental import pallas as pl
from jax.experimental.pallas import tpu as pltpu

_LANE = 128
_MAX_BLOCK_ROWS_F32 = 2048   # 2048x128 f32 tile = 1 MiB per input per step.
_NUM_SPLITS = 2              # leading "parallel" axis (2 TensorCores on v7x).


def _sublane_multiple(dtype) -> int:
    # Second-to-last block dim must respect the dtype's min tile
    # (8 rows for 4-byte, 16 for 2-byte, 32 for 1-byte).
    return max(8, 32 // jnp.dtype(dtype).itemsize)


def _bce_kernel(x_ref, t_ref, o_ref, acc_ref, *, bpc, total_blocks, tail_rows,
                inv_n, need_mask, has_excess):
    c = pl.program_id(0)          # split ("core") index
    i = pl.program_id(1)          # block index within this split

    @pl.when(i == 0)
    def _():
        acc_ref[...] = jnp.zeros_like(acc_ref)

    # TODO(synk): on v7x with bf16 inputs and hard {0,1} labels, max(x,0) and
    # x*t could stay in bf16 to shave VALU work; kept f32 so soft labels are exact.
    x = x_ref[...].astype(jnp.float32)
    t = t_ref[...].astype(jnp.float32)
    # Numerically stable BCE with logits:
    #   loss = max(x, 0) - x * t + log1p(exp(-|x|))
    loss = jnp.maximum(x, 0.0) - x * t + jnp.log1p(jnp.exp(-jnp.abs(x)))

    gblock = c * bpc + i          # global block index

    if need_mask or has_excess:
        # Steady state: unmasked accumulate (mask cost only on the tail step).
        @pl.when(gblock < total_blocks - 1)
        def _():
            acc_ref[...] += loss

        # Globally-last block: select away the ragged rows (never a multiply,
        # so unspecified OOB block contents / NaNs cannot leak into the sum).
        @pl.when(gblock == total_blocks - 1)
        def _():
            if need_mask:
                row = jax.lax.broadcasted_iota(jnp.int32, loss.shape, 0)
                acc_ref[...] += jnp.where(row < tail_rows, loss, 0.0)
            else:
                acc_ref[...] += loss
        # gblock > total_blocks - 1 (clamped duplicate block on the excess step
        # of an odd split): contributes nothing.
    else:
        acc_ref[...] += loss

    @pl.when(i == pl.num_programs(1) - 1)
    def _():
        partial = jnp.sum(acc_ref[...]) * inv_n
        o_ref[...] = jnp.zeros(o_ref.shape, jnp.float32) + partial


def wrapped_bce_loss(inputs, targets, reduce=True):
    """Equivalent of F.binary_cross_entropy_with_logits(inputs, targets) (mean)."""
    assert inputs.shape == targets.shape
    n = inputs.size

    xf = inputs.reshape(-1)
    tf = targets.reshape(-1)

    # Pad only up to the next 128-lane multiple (no-op when already aligned).
    # Padded logits of -1e4 with target 0 contribute exactly 0 loss, so no
    # mask stream is needed.
    # TODO(synk): for ragged n this concatenate costs an extra HBM pass; a
    # manual-DMA variant (memory_space=pl.ANY on the flat unpadded buffers)
    # would avoid it but is not worth the complexity for the rare ragged case.
    rem = n % _LANE
    if rem:
        pad = _LANE - rem
        xf = jnp.concatenate([xf, jnp.full((pad,), -1e4, dtype=xf.dtype)])
        tf = jnp.concatenate([tf, jnp.zeros((pad,), dtype=tf.dtype)])

    X = xf.reshape(-1, _LANE)
    T = tf.reshape(-1, _LANE)
    n_rows = X.shape[0]

    # Block sizing: ~1 MiB of HBM traffic per input per step, scaled by dtype
    # (f32 -> 2048 rows, bf16 -> 4096 rows), rounded to the sublane tile.
    mult = max(_sublane_multiple(X.dtype), _sublane_multiple(T.dtype))
    max_rows = (_MAX_BLOCK_ROWS_F32 * 4) // jnp.dtype(X.dtype).itemsize
    block_rows = min(max_rows, ((n_rows + mult - 1) // mult) * mult)

    total_blocks = pl.cdiv(n_rows, block_rows)
    num_splits = _NUM_SPLITS if total_blocks >= _NUM_SPLITS else 1
    bpc = pl.cdiv(total_blocks, num_splits)          # blocks per split
    has_excess = num_splits * bpc > total_blocks     # odd split -> one dup step
    need_mask = (n_rows % block_rows) != 0
    tail_rows = n_rows - (total_blocks - 1) * block_rows

    if has_excess:
        def in_map(c, i):
            return (jnp.minimum(c * bpc + i, total_blocks - 1), 0)
    else:
        def in_map(c, i):
            return (c * bpc + i, 0)

    bytes_in = n * (jnp.dtype(X.dtype).itemsize + jnp.dtype(T.dtype).itemsize)

    out = pl.pallas_call(
        functools.partial(
            _bce_kernel,
            bpc=bpc,
            total_blocks=total_blocks,
            tail_rows=tail_rows,
            inv_n=1.0 / float(n),
            need_mask=need_mask,
            has_excess=has_excess,
        ),
        out_shape=jax.ShapeDtypeStruct((num_splits * 8, _LANE), jnp.float32),
        grid_spec=pltpu.PrefetchScalarGridSpec(
            num_scalar_prefetch=0,
            grid=(num_splits, bpc),
            in_specs=[
                pl.BlockSpec((block_rows, _LANE), in_map),
                pl.BlockSpec((block_rows, _LANE), in_map),
            ],
            out_specs=pl.BlockSpec((8, _LANE), lambda c, i: (c, 0)),
            scratch_shapes=[pltpu.VMEM((block_rows, _LANE), jnp.float32)],
        ),
        compiler_params=pltpu.CompilerParams(
            dimension_semantics=("parallel", "arbitrary"),
        ),
        cost_estimate=pl.CostEstimate(
            flops=6 * n,
            transcendentals=2 * n,
            bytes_accessed=bytes_in + num_splits * 8 * _LANE * 4,
        ),
    )(X, T)
    # Per-split partial means live at rows 0, 8, ...; sum them.
    return jnp.sum(out[0::8, 0])


def _reference_bce(inputs, targets):
    x = inputs.astype(jnp.float32)
    t = targets.astype(jnp.float32)
    loss = jnp.maximum(x, 0.0) - x * t + jnp.log1p(jnp.exp(-jnp.abs(x)))
    return jnp.mean(loss)


if __name__ == "__main__":
    key = jax.random.PRNGKey(0)

    # Relation-proposal-style inputs: per-pair relatedness logits & binary targets.
    cases = [
        ((2, 4, 16, 16), jnp.float32),    # spec-sized case (lane aligned, 1 block)
        ((16, 8, 64, 64), jnp.float32),   # multi-block -> 2-way "parallel" split
        ((3, 5, 17, 19), jnp.float32),    # ragged n -> padded tail + row mask
        ((16, 8, 64, 64), jnp.bfloat16),  # bf16 streams (wider blocks)
    ]
    for shape, dtype in cases:
        key, k1, k2 = jax.random.split(key, 3)
        logits = (jax.random.normal(k1, shape, dtype=jnp.float32) * 2.0).astype(dtype)
        targets = (jax.random.uniform(k2, shape) > 0.5).astype(dtype)

        loss = wrapped_bce_loss(logits, targets)
        jax.block_until_ready(loss)

        ref = _reference_bce(logits, targets)
        tol = 1e-5 if dtype == jnp.float32 else 1e-4
        assert jnp.allclose(loss, ref, rtol=tol, atol=tol), (shape, dtype, loss, ref)

    print("KERNEL_OK")
</pallas_src>

<mosaic_0001>
module attributes {stable_mosaic.version = 11 : i64} {
  func.func @_bce_kernel(%arg0: i32, %arg1: i32, %arg2: memref<16x128xf32, #tpu.memory_space<vmem>>, %arg3: memref<16x128xf32, #tpu.memory_space<vmem>>, %arg4: memref<8x128xf32, #tpu.memory_space<vmem>>, %arg5: memref<16x128xf32, #tpu.memory_space<vmem>>) attributes {dimension_semantics = [#tpu.dimension_semantics<parallel>, #tpu.dimension_semantics<arbitrary>], iteration_bounds = array<i64: 1, 1>, scalar_prefetch = 0 : i64, scratch_operands = 1 : i64, tpu.core_type = #tpu.core_type<tc>, window_params = [{transform_indices = @transform_0, window_bounds = array<i64: 16, 128>}, {transform_indices = @transform_1, window_bounds = array<i64: 16, 128>}, {transform_indices = @transform_2, window_bounds = array<i64: 8, 128>}]} {
    %c0_i32 = arith.constant 0 : i32
    %0 = arith.cmpi eq, %arg1, %c0_i32 : i32
    %1 = arith.extui %0 : i1 to i32
    %c0_i32_0 = arith.constant 0 : i32
    %2 = arith.cmpi ne, %1, %c0_i32_0 : i32
    scf.if %2 {
      %cst_11 = arith.constant 0.000000e+00 : f32
      %21 = vector.broadcast %cst_11 : f32 to vector<16x128xf32>
      %c0_12 = arith.constant 0 : index
      %c0_13 = arith.constant 0 : index
      %22 = vector.load %arg5[%c0_12, %c0_13] : memref<16x128xf32, #tpu.memory_space<vmem>>, vector<16x128xf32>
      tpu.vector_store %arg5[%c0_12, %c0_13], %21 {strides = array<i32>} : memref<16x128xf32, #tpu.memory_space<vmem>>, vector<16x128xf32>,
    } else {
    }
    %c0 = arith.constant 0 : index
    %c0_1 = arith.constant 0 : index
    %3 = vector.load %arg2[%c0, %c0_1] : memref<16x128xf32, #tpu.memory_space<vmem>>, vector<16x128xf32>
    %c0_2 = arith.constant 0 : index
    %c0_3 = arith.constant 0 : index
    %4 = vector.load %arg3[%c0_2, %c0_3] : memref<16x128xf32, #tpu.memory_space<vmem>>, vector<16x128xf32>
    %cst = arith.constant 0.000000e+00 : f32
    %5 = vector.broadcast %cst : f32 to vector<16x128xf32>
    %6 = arith.maximumf %3, %5 : vector<16x128xf32>
    %7 = arith.mulf %3, %4 : vector<16x128xf32>
    %8 = arith.subf %6, %7 : vector<16x128xf32>
    %9 = math.absf %3 : vector<16x128xf32>
    %cst_4 = arith.constant 0.000000e+00 : f32
    %10 = vector.broadcast %cst_4 : f32 to vector<16x128xf32>
    %11 = arith.subf %10, %9 : vector<16x128xf32>
    %12 = math.exp %11 : vector<16x128xf32>
    %13 = math.log1p %12 : vector<16x128xf32>
    %14 = arith.addf %8, %13 : vector<16x128xf32>
    %c0_5 = arith.constant 0 : index
    %c0_6 = arith.constant 0 : index
    %15 = vector.load %arg5[%c0_5, %c0_6] : memref<16x128xf32, #tpu.memory_space<vmem>>, vector<16x128xf32>
    %16 = arith.addf %15, %14 : vector<16x128xf32>
    %c0_7 = arith.constant 0 : index
    %c0_8 = arith.constant 0 : index
    %17 = vector.load %arg5[%c0_7, %c0_8] : memref<16x128xf32, #tpu.memory_space<vmem>>, vector<16x128xf32>
    tpu.vector_store %arg5[%c0_7, %c0_8], %16 {strides = array<i32>} : memref<16x128xf32, #tpu.memory_space<vmem>>, vector<16x128xf32>,
    %c0_i32_9 = arith.constant 0 : i32
    %18 = arith.cmpi eq, %arg1, %c0_i32_9 : i32
    %19 = arith.extui %18 : i1 to i32
    %c0_i32_10 = arith.constant 0 : i32
    %20 = arith.cmpi ne, %19, %c0_i32_10 : i32
    scf.if %20 {
      %c0_11 = arith.constant 0 : index
      %c0_12 = arith.constant 0 : index
      %21 = vector.load %arg5[%c0_11, %c0_12] : memref<16x128xf32, #tpu.memory_space<vmem>>, vector<16x128xf32>
      %22 = vector.shape_cast %21 : vector<16x128xf32> to vector<1x16x128xf32>
      %cst_13 = arith.constant dense<0.000000e+00> : vector<1xf32>
      %23 = vector.multi_reduction <add>, %22, %cst_13 [1, 2] : vector<1x16x128xf32> to vector<1xf32>
      %24 = vector.shape_cast %23 : vector<1xf32> to vector<1x1x1xf32>
      %25 = vector.extract %24[0, 0, 0] : f32 from vector<1x1x1xf32>
      %cst_14 = arith.constant 4.8828125E-4 : f32
      %26 = arith.mulf %25, %cst_14 : f32
      %cst_15 = arith.constant 0.000000e+00 : f32
      %27 = vector.broadcast %cst_15 : f32 to vector<8x128xf32>
      %28 = vector.broadcast %26 : f32 to vector<8x128xf32>
      %29 = arith.addf %27, %28 : vector<8x128xf32>
      %c0_16 = arith.constant 0 : index
      %c0_17 = arith.constant 0 : index
      %30 = vector.load %arg4[%c0_16, %c0_17] : memref<8x128xf32, #tpu.memory_space<vmem>>, vector<8x128xf32>
      tpu.vector_store %arg4[%c0_16, %c0_17], %29 {strides = array<i32>} : memref<8x128xf32, #tpu.memory_space<vmem>>, vector<8x128xf32>,
    } else {
    }
    return
  }
  func.func @transform_0(%arg0: i32, %arg1: i32) -> (i32, i32) {
    %c1_i32 = arith.constant 1 : i32
    %0 = arith.muli %arg0, %c1_i32 : i32
    %1 = arith.addi %0, %arg1 : i32
    %c0_i32 = arith.constant 0 : i32
    %c0_i32_0 = arith.constant 0 : i32
    return %1, %c0_i32 : i32, i32
  }
  func.func @transform_1(%arg0: i32, %arg1: i32) -> (i32, i32) {
    %c1_i32 = arith.constant 1 : i32
    %0 = arith.muli %arg0, %c1_i32 : i32
    %1 = arith.addi %0, %arg1 : i32
    %c0_i32 = arith.constant 0 : i32
    %c0_i32_0 = arith.constant 0 : i32
    return %1, %c0_i32 : i32, i32
  }
  func.func @transform_2(%arg0: i32, %arg1: i32) -> (i32, i32) {
    %c0_i32 = arith.constant 0 : i32
    %c0_i32_0 = arith.constant 0 : i32
    return %arg0, %c0_i32 : i32, i32
  }
}

</mosaic_0001>

<bundles_post_ra>
// kernel: tpu_custom_call.1
= control target key start
LH: loop header
LB: loop body
LE: loop exit
PB: predicated region body
PF: predicated region fallthrough
CT: control target
= control target key end

     0   :  { %7 = vsyncpa [#allocation4], 0  ;;  %s265_s0 = inlined_call_operand.hbm [shape: f32[16,128], index: 0, kind: input, shape index: {}]   ;;  %s266_s1 = inlined_call_operand.hbm [shape: f32[16,128], index: 1, kind: input, shape index: {}]   ;;  %s267_s2 = inlined_call_operand.hbm [shape: f32[8,128], index: 2, kind: output, shape index: {}]  }
   0x1   :  { %8 = vsyncpa [#allocation7], 0 }
   0x2   :  { %9 = vsyncpa [#allocation5], 0  ;;  %s18_s11 = sshll.u32 %s265_s0, 4  ;;  %s236_s12 = smov [#allocation3]   ;;  %s19_s11 = int_to_ptr.hbm [resolvable:$true] %s18_s11 }
   0x3   :  { %s20_s13 = sshll.u32 %s236_s12, 4  ;;  %s35_s16 = sshll.u32 %s266_s1, 4  ;;  %s21_s13 = int_to_ptr.vmem [resolvable:$true] %s20_s13  ;;  %s36_s16 = int_to_ptr.hbm [resolvable:$true] %s35_s16 }
   0x4   :  { %s237_s17 = smov 128   ;;  %s238_s18 = smov 8  }
   0x5   :  { %26 = dma.hbm_to_vmem [thread:$0]  %s19_s11, 256, %s21_s13, [#allocation4], %s237_s17, %s237_s17, %s238_s18  }
   0x6   :  { %s239_s19 = smov [#allocation6]  }
   0x7   :  { %s37_s20 = sshll.u32 %s239_s19, 4  ;;  %s38_s20 = int_to_ptr.vmem [resolvable:$true] %s37_s20 }
   0x8   :  { %43 = dma.hbm_to_vmem [thread:$0]  %s36_s16, 256, %s38_s20, [#allocation7], %s237_s17, %s237_s17, %s238_s18  }
   0x9   :  { %230 = dma.done.wait [#allocation4], 256  }
   0xa   :  { %231 = vsyncadd [#allocation4], 4294967040 }
   0xb   :  { %232 = dma.done.wait [#allocation7], 256  }
   0xc   :  { %233 = vsyncadd [#allocation7], 4294967040  ;;  %v62_v0 = vld [vmem:[#allocation3] sm:$0xff]  ;;  %v63_v1 = vld [vmem:[#allocation3 + $0x8] sm:$0xff]  ;;  %s240_s0 = smov [#allocation8]   ;;  %s132_s23 = sshll.u32 %s267_s2, 4  ;;  %s133_s23 = int_to_ptr.hbm [resolvable:$true] %s132_s23 }
   0xd   :  { %v72_v2 = vand.u32 2147483647, %v62_v0  ;;  %v73_v3 = vand.u32 2147483647, %v63_v1  ;;  %v64_v12 = vld [vmem:[#allocation6] sm:$0xff]  ;;  %v65_v15 = vld [vmem:[#allocation6 + $0x8] sm:$0xff] }
   0xe   :  { %v66_v17 = vmax.f32 %v62_v0, 0.0  ;;  %v68_v18 = vmul.f32 %v64_v12, %v62_v0  ;;  %v67_v21 = vmax.f32 %v63_v1, 0.0  ;;  %v69_v22 = vmul.f32 %v65_v15, %v63_v1  ;;  %s130_s1 = sshll.u32 %s240_s0, 4  ;;  %s131_s1 = int_to_ptr.vmem [resolvable:$true] %s130_s1 }
   0xf   :  { %v74_v4 = vsub.f32 0.0, %v72_v2  ;;  %v75_v5 = vsub.f32 0.0, %v73_v3 }
  0x10   :  { %v70_v26 = vsub.f32 %v66_v17, %v68_v18  ;;  %v71_v29 = vsub.f32 %v67_v21, %v69_v22 }
  0x11   :  { %v76_v6 = vmul.f32 1.442695, %v74_v4  ;;  %v78_v7 = vmul.f32 1.442695, %v75_v5 }
  0x13   :  { %150 = vpow2.f32 %v76_v6 }
  0x14   :  { %152 = vpow2.f32 %v78_v7 }
  0x19   :  { %v151_v8 = vpop.eup %150 }
  0x1a   :  { %v153_v9 = vpop.eup %152  ;;  %v80_v10 = vadd.f32 1.0, %v151_v8  ;;  %v83_v11 = vmul.f32 -0.5, %v151_v8  ;;  %v86_v19 = vand.u32 2147483647, %v151_v8 }
  0x1b   :  { %v89_v13 = vadd.f32 1.0, %v153_v9  ;;  %v92_v14 = vmul.f32 -0.5, %v153_v9  ;;  %v95_v23 = vand.u32 2147483647, %v153_v9 }
  0x1c   :  { %154 = vlog2.f32 %v80_v10  ;;  %v84_v16 = vadd.f32 1.0, %v83_v11  ;;  %vm87_vm0 = vcmp.lt.f32.partialorder %v86_v19, 0.0004427343 }
  0x1d   :  { %156 = vlog2.f32 %v89_v13  ;;  %v93_v20 = vadd.f32 1.0, %v92_v14  ;;  %vm96_vm1 = vcmp.lt.f32.partialorder %v95_v23, 0.0004427343 }
  0x1e   :  { %v85_v24 = vmul.f32 %v151_v8, %v84_v16 }
  0x1f   :  { %v94_v27 = vmul.f32 %v153_v9, %v93_v20 }
  0x22   :  { %v155_v25 = vpop.eup %154 }
  0x23   :  { %v157_v28 = vpop.eup %156  ;;  %v82_v30 = vmul.f32 0.6931472, %v155_v25 }
  0x24   :  { %v91_v31 = vmul.f32 0.6931472, %v157_v28 }
  0x25   :  { %v88_v32 = vsel %vm87_vm0, %v85_v24, %v82_v30 }
  0x26   :  { %v97_v33 = vsel %vm96_vm1, %v94_v27, %v91_v31  ;;  %v98_v34 = vadd.f32 %v88_v32, %v70_v26 }
  0x27   :  { %v99_v35 = vadd.f32 %v97_v33, %v71_v29 }
  0x29   :  { %v111_v36 = vadd.f32 %v99_v35, %v98_v34 }
  0x2b   :  { %112 = vadd.xlane.f32.xlu0 %v111_v36 }
  0x9e   :  { %v113_v37 = vpop.xlane.xlu0 %112 }
  0x9f   :  { %v114_v38 = vrot.slane %v113_v37, 4 }
  0xa1   :  { %v115_v39 = vadd.f32 %v114_v38, %v113_v37 }
  0xa3   :  { %v116_v40 = vrot.slane %v115_v39, 2 }
  0xa5   :  { %v117_v41 = vadd.f32 %v116_v40, %v115_v39 }
  0xa7   :  { %v118_v42 = vrot.slane %v117_v41, 1 }
  0xa9   :  { %v119_v43 = vadd.f32 %v118_v42, %v117_v41 }
  0xab   :  { %143 = vpush %v119_v43 }
  0xdc   :  { %s144_s24 = spop %143 }
  0xdd   :  { %s121_s25 = smul.f32 0.00048828125, %s144_s24 }
  0xdf   :  { %v122_v44 = vstv %s121_s25 }
  0xe0   :  { %124 = vst [vmem:[#allocation8] sm:$0xff] %v122_v44 }
  0xe1   :  { %135 = dma.vmem_to_hbm [thread:$0]  %s131_s1, 128, %s133_s23, [#allocation5]  }
  0xe2   :  { %234 = dma.done.wait [#allocation5], 128  }
  0xe3   :  { %235 = vsyncadd [#allocation5], 4294967168 }
  0xe4   :  { %140 = vsyncpa [#allocation4], 1 }
  0xe5   :  { %141 = vsyncpa [#allocation7], 1 }
  0xe6   :  { %142 = vsyncpa [#allocation5], 1 }

</bundles_post_ra>
